<compile_context>
chip_gen: v7x
topology: tpu7x:2x2x1
jax: 0.10.0
libtpu: 0.0.40
codegen_flags: <defaults>
</compile_context>

<pallas_src>
import jax
import jax.numpy as jnp
from jax.experimental import pallas as pl
from jax.experimental.pallas import tpu as pltpu


def _linear_rowmax_kernel(x_ref, w_ref, b_ref, o_ref):
    # x_ref: (1, C, TN) VMEM  -- one batch, all channels, TN positions (lanes)
    # w_ref: (N_out, C) SMEM  -- torch Linear weight layout, scalar reads
    # b_ref: (N_out,)   SMEM  -- bias, scalar reads
    # o_ref: (1, 1, TN) VMEM  -- per-position max over output features
    x = x_ref[0]                                  # (C, TN)
    n_out, c_dim = w_ref.shape
    m = None
    for o in range(n_out):                        # unrolled, static trip count
        row = x[0:1, :] * w_ref[o, 0]             # (1, TN) VPU lane-wise
        for c in range(1, c_dim):
            row = row + x[c:c + 1, :] * w_ref[o, c]
        row = row + b_ref[o]                      # z[o, :] = v2[b, :, o]
        m = row if m is None else jnp.maximum(m, row)
    # v5 = softmax(v1) in the torch module is dead code (never used): skipped.
    o_ref[0] = m                                  # (1, TN) into (1, 1, TN) block


def _pick_tn(N, C, B):
    """Lane tile along the position axis N, VMEM-budgeted (~2 MiB/block)."""
    LANE = 128
    if N <= LANE:
        return N                                  # full-dim block (tiny case)
    target_bytes = 2 * 1024 * 1024                # >=1 MiB blocks ~ 85% of HBM roofline
    tn = max(LANE, (target_bytes // (4 * C)) // LANE * LANE)
    n_up = pl.cdiv(N, LANE) * LANE                # at most one ragged block over N
    tn = min(tn, n_up)
    if B == 1 and pl.cdiv(N, tn) < 2:
        # v7x megacore: keep >= 2 grid steps so both TensorCores get work.
        tn = max(LANE, ((N // 2) // LANE) * LANE)
    return tn


def model_forward(x1, weight, bias):
    """Forward of the torch Model.

    x1:     (B, C, N) float32  (channels-first, like the torch input)
    weight: (N_out, C) float32 (torch.nn.Linear weight layout)
    bias:   (N_out,)   float32
    returns (B, N, 1) float32 == max(F.linear(x1.permute(0,2,1), W, b), dim=2, keepdim=True)
    """
    B, C, N = x1.shape
    N_out, C_w = weight.shape
    assert C_w == C, "weight in_features must match channel dim of x1"

    TN = _pick_tn(N, C, B)
    grid = (B, pl.cdiv(N, TN))

    cost = pl.CostEstimate(
        flops=2 * B * N * C * N_out,
        transcendentals=0,
        bytes_accessed=4 * (B * C * N + N_out * C + N_out + B * N),
    )

    out = pl.pallas_call(
        _linear_rowmax_kernel,
        out_shape=jax.ShapeDtypeStruct((B, 1, N), jnp.float32),
        grid=grid,
        in_specs=[
            # Activation stream: double-buffered per (batch, position-tile).
            # Ragged last tile: Pallas pads on read / drops OOB lanes on write.
            pl.BlockSpec((1, C, TN), lambda b, n: (b, 0, n)),
            # Tiny weight & bias: SMEM-resident, read as scalars in the kernel.
            pl.BlockSpec(memory_space=pltpu.MemorySpace.SMEM),
            pl.BlockSpec(memory_space=pltpu.MemorySpace.SMEM),
        ],
        out_specs=pl.BlockSpec((1, 1, TN), lambda b, n: (b, 0, n)),
        compiler_params=pltpu.CompilerParams(
            dimension_semantics=("parallel", "parallel"),
            vmem_limit_bytes=32 * 1024 * 1024,  # safe on v5e/v6e/v7x; blocks ~2 MiB
        ),
        cost_estimate=cost,
    )(x1, weight, bias)

    # (B, 1, N) -> (B, N, 1): pure metadata reshape (one of the dims is 1).
    return out.reshape(B, N, 1)


def _reference(x1, weight, bias):
    v1 = jnp.transpose(x1, (0, 2, 1))
    v2 = jnp.einsum("bnc,oc->bno", v1, weight,
                    precision=jax.lax.Precision.HIGHEST) + bias
    return jnp.max(v2, axis=2, keepdims=True)


if __name__ == "__main__":
    key = jax.random.PRNGKey(0)
    k_x, k_w, k_b, k_x2, k_w2, k_b2 = jax.random.split(key, 6)

    # --- Case 1: exact module shapes: x1 = randn(1, 2, 2), Linear(2, 2) ------
    B, C, N, N_out = 1, 2, 2, 2
    x1 = jax.random.normal(k_x, (B, C, N), dtype=jnp.float32)
    bound = 1.0 / jnp.sqrt(jnp.float32(C))
    weight = jax.random.uniform(k_w, (N_out, C), minval=-bound, maxval=bound,
                                dtype=jnp.float32)
    bias = jax.random.uniform(k_b, (N_out,), minval=-bound, maxval=bound,
                              dtype=jnp.float32)

    out = jax.block_until_ready(model_forward(x1, weight, bias))
    ref = _reference(x1, weight, bias)
    assert out.shape == (B, N, 1)
    assert jnp.allclose(out, ref, atol=1e-4, rtol=1e-4)

    # --- Case 2: larger shapes to exercise the tiled + ragged-block path -----
    B2, C2, N2, N_out2 = 2, 16, 1000, 8
    x1b = jax.random.normal(k_x2, (B2, C2, N2), dtype=jnp.float32)
    bound2 = 1.0 / jnp.sqrt(jnp.float32(C2))
    weight2 = jax.random.uniform(k_w2, (N_out2, C2), minval=-bound2,
                                 maxval=bound2, dtype=jnp.float32)
    bias2 = jax.random.uniform(k_b2, (N_out2,), minval=-bound2, maxval=bound2,
                               dtype=jnp.float32)

    out2 = jax.block_until_ready(model_forward(x1b, weight2, bias2))
    ref2 = _reference(x1b, weight2, bias2)
    assert out2.shape == (B2, N2, 1)
    assert jnp.allclose(out2, ref2, atol=1e-4, rtol=1e-4)

    print("KERNEL_OK")
</pallas_src>

<mosaic_0001>
module attributes {stable_mosaic.version = 11 : i64} {
  func.func @_linear_rowmax_kernel(%arg0: i32, %arg1: i32, %arg2: memref<1x2x2xf32, #tpu.memory_space<vmem>>, %arg3: memref<2x2xf32, #tpu.memory_space<smem>>, %arg4: memref<2xf32, #tpu.memory_space<smem>>, %arg5: memref<1x1x2xf32, #tpu.memory_space<vmem>>) attributes {dimension_semantics = [#tpu.dimension_semantics<parallel>, #tpu.dimension_semantics<parallel>], iteration_bounds = array<i64: 1, 1>, scalar_prefetch = 0 : i64, scratch_operands = 0 : i64, tpu.core_type = #tpu.core_type<tc>, window_params = [{transform_indices = @transform_0, window_bounds = array<i64: 1, 2, 2>}, {transform_indices = @transform_1, window_bounds = array<i64: 2, 2>}, {transform_indices = @transform_2, window_bounds = array<i64: 2>}, {transform_indices = @transform_3, window_bounds = array<i64: 1, 1, 2>}]} {
    %c0 = arith.constant 0 : index
    %c0_0 = arith.constant 0 : index
    %c0_1 = arith.constant 0 : index
    %0 = vector.load %arg2[%c0, %c0_0, %c0_1] : memref<1x2x2xf32, #tpu.memory_space<vmem>>, vector<1x2x2xf32>
    %1 = vector.shape_cast %0 : vector<1x2x2xf32> to vector<2x2xf32>
    %2 = vector.extract_strided_slice %1 {offsets = [0, 0], sizes = [1, 2], strides = [1, 1]} : vector<2x2xf32> to vector<1x2xf32>
    %c0_2 = arith.constant 0 : index
    %c0_3 = arith.constant 0 : index
    %3 = memref.load %arg3[%c0_2, %c0_3] : memref<2x2xf32, #tpu.memory_space<smem>>
    %4 = vector.broadcast %3 : f32 to vector<1x2xf32>
    %5 = arith.mulf %2, %4 : vector<1x2xf32>
    %6 = vector.extract_strided_slice %1 {offsets = [1, 0], sizes = [1, 2], strides = [1, 1]} : vector<2x2xf32> to vector<1x2xf32>
    %c0_4 = arith.constant 0 : index
    %c1 = arith.constant 1 : index
    %7 = memref.load %arg3[%c0_4, %c1] : memref<2x2xf32, #tpu.memory_space<smem>>
    %8 = vector.broadcast %7 : f32 to vector<1x2xf32>
    %9 = arith.mulf %6, %8 : vector<1x2xf32>
    %10 = arith.addf %5, %9 : vector<1x2xf32>
    %c0_5 = arith.constant 0 : index
    %11 = memref.load %arg4[%c0_5] : memref<2xf32, #tpu.memory_space<smem>>
    %12 = vector.broadcast %11 : f32 to vector<1x2xf32>
    %13 = arith.addf %10, %12 : vector<1x2xf32>
    %14 = vector.extract_strided_slice %1 {offsets = [0, 0], sizes = [1, 2], strides = [1, 1]} : vector<2x2xf32> to vector<1x2xf32>
    %c1_6 = arith.constant 1 : index
    %c0_7 = arith.constant 0 : index
    %15 = memref.load %arg3[%c1_6, %c0_7] : memref<2x2xf32, #tpu.memory_space<smem>>
    %16 = vector.broadcast %15 : f32 to vector<1x2xf32>
    %17 = arith.mulf %14, %16 : vector<1x2xf32>
    %18 = vector.extract_strided_slice %1 {offsets = [1, 0], sizes = [1, 2], strides = [1, 1]} : vector<2x2xf32> to vector<1x2xf32>
    %c1_8 = arith.constant 1 : index
    %c1_9 = arith.constant 1 : index
    %19 = memref.load %arg3[%c1_8, %c1_9] : memref<2x2xf32, #tpu.memory_space<smem>>
    %20 = vector.broadcast %19 : f32 to vector<1x2xf32>
    %21 = arith.mulf %18, %20 : vector<1x2xf32>
    %22 = arith.addf %17, %21 : vector<1x2xf32>
    %c1_10 = arith.constant 1 : index
    %23 = memref.load %arg4[%c1_10] : memref<2xf32, #tpu.memory_space<smem>>
    %24 = vector.broadcast %23 : f32 to vector<1x2xf32>
    %25 = arith.addf %22, %24 : vector<1x2xf32>
    %26 = arith.maximumf %13, %25 : vector<1x2xf32>
    %c0_11 = arith.constant 0 : index
    %c0_12 = arith.constant 0 : index
    %c0_13 = arith.constant 0 : index
    %27 = vector.load %arg5[%c0_11, %c0_12, %c0_13] : memref<1x1x2xf32, #tpu.memory_space<vmem>>, vector<1x1x2xf32>
    %28 = vector.shape_cast %27 : vector<1x1x2xf32> to vector<1x2xf32>
    %29 = vector.shape_cast %26 : vector<1x2xf32> to vector<1x1x2xf32>
    tpu.vector_store %arg5[%c0_11, %c0_12, %c0_13], %29 {strides = array<i32>} : memref<1x1x2xf32, #tpu.memory_space<vmem>>, vector<1x1x2xf32>,
    return
  }
  func.func @transform_0(%arg0: i32, %arg1: i32) -> (i32, i32, i32) {
    %c0_i32 = arith.constant 0 : i32
    %c0_i32_0 = arith.constant 0 : i32
    return %arg0, %c0_i32, %arg1 : i32, i32, i32
  }
  func.func @transform_1(%arg0: i32, %arg1: i32) -> (i32, i32) {
    %c0_i32 = arith.constant 0 : i32
    %c0_i32_0 = arith.constant 0 : i32
    %c0_i32_1 = arith.constant 0 : i32
    return %c0_i32, %c0_i32_0 : i32, i32
  }
  func.func @transform_2(%arg0: i32, %arg1: i32) -> i32 {
    %c0_i32 = arith.constant 0 : i32
    %c0_i32_0 = arith.constant 0 : i32
    return %c0_i32 : i32
  }
  func.func @transform_3(%arg0: i32, %arg1: i32) -> (i32, i32, i32) {
    %c0_i32 = arith.constant 0 : i32
    %c0_i32_0 = arith.constant 0 : i32
    return %arg0, %c0_i32, %arg1 : i32, i32, i32
  }
}

</mosaic_0001>

<bundles_post_ra>
// kernel: tpu_custom_call.1
= control target key start
LH: loop header
LB: loop body
LE: loop exit
PB: predicated region body
PF: predicated region fallthrough
CT: control target
= control target key end

     0   :  { %8 = vsyncpa [#allocation3], 0  ;;  %s237_s0 = inlined_call_operand.hbm [shape: f32[1,2,2], index: 0, kind: input, shape index: {}]   ;;  %s238_s1 = inlined_call_operand.vmem [shape: f32[2,2], index: 1, kind: input, shape index: {}]   ;;  %s239_s2 = inlined_call_operand.vmem [shape: f32[2], index: 2, kind: input, shape index: {}]   ;;  %s240_s3 = inlined_call_operand.hbm [shape: f32[1,1,2], index: 3, kind: output, shape index: {}]  }
   0x1   :  { %9 = vsyncpa [#allocation5], 0 }
   0x2   :  { %10 = vsyncpa [#allocation8], 0 }
   0x3   :  { %11 = vsyncpa [#allocation4], 0  ;;  %s28_s14 = sshll.u32 %s238_s1, 4  ;;  %s183_s15 = smov [#allocation2]   ;;  %s29_s14 = int_to_ptr.vmem [resolvable:$true] %s28_s14 }
   0x4   :  { %s18_s16 = sshll.u32 %s183_s15, 4  ;;  %s107_s19 = scalar_lea.hbm %s237_s0, 32  ;;  %s19_s16 = int_to_ptr.vmem [resolvable:$true] %s18_s16 }
   0x5   :  { %p108_p0 = scmp.ne.s32.totalorder %s237_s0, %s107_s19  ;;  %p111_p1 = scmp.lt.u32.totalorder %s107_s19, %s237_s0 }
   0x7   :  { %p113_p2 = pnand %p111_p1, %p108_p0 }
   0x9   :  { %116 = shalt.err (!%p113_p2)
}
   0xa   :  { %s117_s24 = scalar_lea.vmem %s19_s16, 32  ;;  %p122_p4 = scmp.lt.s32.totalorder %s19_s16, %s19_s16 }
   0xb   :  { %p118_p3 = scmp.ne.s32.totalorder %s19_s16, %s117_s24  ;;  %p123_p5 = scmp.lt.s32.totalorder %s117_s24, %s117_s24 }
   0xd   :  { %p124_p6 = por %p123_p5, %p122_p4 }
   0xf   :  { %p125_p7 = pnand %p124_p6, %p118_p3 }
  0x11   :  { %128 = shalt.err (!%p125_p7)
}
  0x12   :  { %21 = dma.hbm_to_vmem [thread:$0]  %s237_s0, 32, %s19_s16, [#allocation3]  }
  0x13   :  { %s129_s26 = scalar_lea.vmem %s29_s14, 32  ;;  %p134_p9 = scmp.lt.s32.totalorder %s29_s14, %s29_s14 }
  0x14   :  { %p130_p8 = scmp.ne.s32.totalorder %s29_s14, %s129_s26  ;;  %p135_p10 = scmp.lt.s32.totalorder %s129_s26, %s129_s26 }
  0x16   :  { %p136_p11 = por %p135_p10, %p134_p9 }
  0x18   :  { %p137_p12 = pnand %p136_p11, %p130_p8 }
  0x1a   :  { %140 = shalt.err (!%p137_p12)
}
  0x1b   :  { %s184_s27 = smov [#allocation6]   ;;  %s38_s30 = sshll.u32 %s239_s2, 4  ;;  %s39_s30 = int_to_ptr.vmem [resolvable:$true] %s38_s30 }
  0x1c   :  { %31 = dma.vmem_to_smem %s29_s14, 32, %s184_s27, [#allocation5]  }
  0x1d   :  { %s141_s4 = scalar_lea.vmem %s39_s30, 16  ;;  %p146_p0 = scmp.lt.s32.totalorder %s39_s30, %s39_s30 }
  0x1e   :  { %p142_p13 = scmp.ne.s32.totalorder %s39_s30, %s141_s4  ;;  %p147_p1 = scmp.lt.s32.totalorder %s141_s4, %s141_s4 }
  0x20   :  { %p148_p2 = por %p147_p1, %p146_p0 }
  0x22   :  { %p149_p3 = pnand %p148_p2, %p142_p13 }
  0x24   :  { %152 = shalt.err (!%p149_p3)
}
  0x25   :  { %s185_s0 = smov [#allocation7]  }
  0x26   :  { %41 = dma.vmem_to_smem %s39_s30, 16, %s185_s0, [#allocation8]  }
  0x27   :  { %175 = dma.done.wait [#allocation3], 32  }
  0x28   :  { %176 = vsyncadd [#allocation3], 4294967264 }
  0x29   :  { %177 = dma.done.wait [#allocation5], 32  }
  0x2a   :  { %178 = vsyncadd [#allocation5], 4294967264 }
  0x2b   :  { %179 = dma.done.wait [#allocation8], 16  }
  0x2c   :  { %180 = vsyncadd [#allocation8], 4294967280 }
  0x2d   :  { %51 = sfence }
  0x2e   :  { %s53_s5 = sld [smem:[#allocation6]]  ;;  %s99_s6 = sld [smem:[#allocation6 + $0x1]]  ;;  %v52_v0 = vld [vmem:[#allocation2] sm:$0x3]  ;;  %vm80_vm0 = vcmask 8192  }
  0x2f   :  { %s100_s2 = sld [smem:[#allocation6 + $0x80]]  ;;  %s101_s8 = sld [smem:[#allocation6 + $0x81]] }
  0x30   :  { %s63_s7 = sld [smem:[#allocation7]]  ;;  %s102_s9 = sld [smem:[#allocation7 + $0x1]] }
  0x31   :  { %s186_s10 = smov [#allocation9]  }
  0x32   :  { %s88_s11 = sshll.u32 %s186_s10, 4  ;;  %s89_s11 = int_to_ptr.vmem [resolvable:$true] %s88_s11 }
  0x33   :  { %s153_s12 = scalar_lea.vmem %s89_s11, 16  ;;  %s157_s13 = scalar_lea.vmem %s89_s11, 32 }
  0x34   :  { %v54_v1 = vstv %s53_s5  ;;  %v57_v2 = vstv %s99_s6  ;;  %p154_p4 = scmp.ne.s32.totalorder %s89_s11, %s153_s12  ;;  %p158_p5 = scmp.lt.s32.totalorder %s89_s11, %s89_s11 }
  0x35   :  { %v55_v3 = vmul.f32 %v54_v1, %v52_v0  ;;  %v58_v4 = vmul.f32 %v57_v2, %v52_v0  ;;  %v67_v5 = vstv %s100_s2  ;;  %v70_v6 = vstv %s101_s8  ;;  %p159_p6 = scmp.lt.s32.totalorder %s157_s13, %s153_s12 }
  0x36   :  { %v68_v8 = vmul.f32 %v67_v5, %v52_v0  ;;  %v71_v9 = vmul.f32 %v70_v6, %v52_v0  ;;  %v64_v10 = vstv %s63_s7  ;;  %v77_v13 = vstv %s102_s9 }
  0x37   :  { %v60_v7 = vrot.slane %v58_v4, 1  ;;  %p160_p7 = por %p159_p6, %p158_p5 }
  0x38   :  { %v73_v12 = vrot.slane %v71_v9, 1 }
  0x39   :  { %v62_v11 = vadd.f32 %v60_v7, %v55_v3  ;;  %p161_p8 = pnand %p160_p7, %p154_p4 }
  0x3a   :  { %v75_v15 = vadd.f32 %v73_v12, %v68_v8 }
  0x3b   :  { %v65_v14 = vadd.f32 %v64_v10, %v62_v11 }
  0x3c   :  { %v78_v16 = vadd.f32 %v77_v13, %v75_v15 }
  0x3e   :  { %v79_v17 = vmax.f32 %v65_v14, %v78_v16 }
  0x40   :  { %81 = vst.msk [vmem:[#allocation9] sm:$0x1] %vm80_vm0, %v79_v17 }
  0x41   :  { %164 = shalt.err (!%p161_p8)
}
  0x42   :  { %s165_s16 = scalar_lea.hbm %s240_s3, 16 }
  0x43   :  { %p166_p9 = scmp.ne.s32.totalorder %s240_s3, %s165_s16  ;;  %p169_p10 = scmp.lt.u32.totalorder %s165_s16, %s240_s3 }
  0x45   :  { %p171_p11 = pnand %p169_p10, %p166_p9 }
  0x47   :  { %174 = shalt.err (!%p171_p11)
}
  0x48   :  { %91 = dma.vmem_to_hbm [thread:$0]  %s89_s11, 16, %s240_s3, [#allocation4]  }
  0x49   :  { %181 = dma.done.wait [#allocation4], 16  }
  0x4a   :  { %182 = vsyncadd [#allocation4], 4294967280 }
  0x4b   :  { %95 = vsyncpa [#allocation3], 1 }
  0x4c   :  { %96 = vsyncpa [#allocation4], 1 }
  0x4d   :  { %97 = vsyncpa [#allocation5], 1 }
  0x4e   :  { %98 = vsyncpa [#allocation8], 1 }

</bundles_post_ra>
